<compile_context>
chip_gen: v5e
topology: v5e:2x2
jax: 0.10.0
libtpu: 0.0.40
codegen_flags: <defaults>
</compile_context>

<pallas_src>
import jax
import jax.numpy as jnp
from jax.experimental import pallas as pl
from jax.experimental.pallas import tpu as pltpu


def _stats_kernel(x_ref, sum_ref, xxt_ref):
    """Accumulate per-group raw moments over the P (lane) tiles."""
    t = pl.program_id(1)

    @pl.when(t == 0)
    def _():
        sum_ref[...] = jnp.zeros_like(sum_ref)
        xxt_ref[...] = jnp.zeros_like(xxt_ref)

    x = x_ref[0]                                                  # (gs, TP)
    sum_ref[0] += jnp.sum(x.astype(jnp.float32), axis=-1, keepdims=True)   # (gs, 1) f32
    # Contract both operands on their last (lane) dim: feeds the MXU directly,
    # no XLU transpose / VMEM copy of x.T.
    xxt_ref[0] += jax.lax.dot_general(
        x, x, (((1,), (1,)), ((), ())), preferred_element_type=jnp.float32)


def _apply_kernel(w_ref, b_ref, x_ref, o_ref):
    """out = L_inv @ x - (L_inv @ mean), per P-tile (grouped 1x1 conv + centering)."""
    y = jnp.dot(w_ref[0], x_ref[0], preferred_element_type=jnp.float32)    # (gs, TP)
    o_ref[0] = (y - b_ref[0]).astype(o_ref.dtype)


def _choose_tp(P, gs, in_bytes, out_bytes, budget_bytes=8 * 1024 * 1024):
    """Largest lane tile (multiple of 128, dividing P) whose double-buffered
    in+out tiles fit a conservative VMEM budget (safe for v5e/v6e/v7x)."""
    per_lane = 2 * gs * (in_bytes + out_bytes)          # double-buffered x tile + out tile
    cap = max(128, budget_bytes // per_lane)
    for tp in (16384, 8192, 4096, 2048, 1024, 512, 256, 128):
        if tp <= cap and P % tp == 0:
            return tp
    return P                                            # full lane extent is always legal


def whitening_forward(x, group_size, eps=1e-3, compute_dtype=jnp.bfloat16):
    """Training-mode forward of _Whitening (batch-statistics path)."""
    N, C, H, W = x.shape
    gs = min(C, group_size)
    assert C % gs == 0, "num_features must be divisible by group_size"
    G = C // gs
    P = N * H * W
    out_dtype = x.dtype

    # Cast to the carry dtype *before* the transpose so the XLA transpose moves half
    # the bytes.  TODO(synk): fold the NCHW->(G,gs,P) transpose into the kernels
    # (contract over (n, hw) directly) to remove this extra HBM pass.
    xg = jnp.transpose(x.astype(compute_dtype), (1, 0, 2, 3)).reshape(G, gs, P)

    in_b = jnp.dtype(compute_dtype).itemsize
    out_b = jnp.dtype(out_dtype).itemsize
    TP = _choose_tp(P, gs, in_b, out_b)
    Tn = P // TP

    vmem_limit = 32 * 1024 * 1024     # within scoped/physical limits on v5e/v6e/v7x
    cparams_stats = pltpu.CompilerParams(
        dimension_semantics=("parallel", "arbitrary"),
        vmem_limit_bytes=vmem_limit)
    cparams_apply = pltpu.CompilerParams(
        dimension_semantics=("parallel", "parallel"),
        vmem_limit_bytes=vmem_limit)

    # ---- Pass 1: per-group raw moments (sum x, sum x x^T), f32 accumulators. ----
    sum_x, xxt = pl.pallas_call(
        _stats_kernel,
        out_shape=(jax.ShapeDtypeStruct((G, gs, 1), jnp.float32),
                   jax.ShapeDtypeStruct((G, gs, gs), jnp.float32)),
        grid=(G, Tn),
        in_specs=[pl.BlockSpec((1, gs, TP), lambda g, t: (g, 0, t))],
        out_specs=(pl.BlockSpec((1, gs, 1), lambda g, t: (g, 0, 0)),
                   pl.BlockSpec((1, gs, gs), lambda g, t: (g, 0, 0))),
        compiler_params=cparams_stats,
    )(xg)

    # ---- Tiny (gs, gs) math in plain JAX. ----
    # TODO(synk): Cholesky / triangular inverse has no clean Pallas TPU primitive.
    mean = sum_x / P                                              # (G, gs, 1) f32
    cov = xxt / P - jnp.einsum('gio,gjo->gij', mean, mean)        # (G, gs, gs) f32
    eye = jnp.eye(gs, dtype=jnp.float32)
    cov_shrunk = (1.0 - eps) * cov + eps * eye[None]
    L = jnp.linalg.cholesky(cov_shrunk)
    L_inv = jax.vmap(
        lambda a: jax.scipy.linalg.solve_triangular(a, eye, lower=True))(L)
    bias = jnp.einsum('gij,gjo->gio', L_inv, mean)                # (G, gs, 1) f32
    L_inv_c = L_inv.astype(compute_dtype)

    # ---- Pass 2: out = L_inv @ x - bias (grouped 1x1 conv on centered data). ----
    out = pl.pallas_call(
        _apply_kernel,
        out_shape=jax.ShapeDtypeStruct((G, gs, P), out_dtype),
        grid=(G, Tn),
        in_specs=[pl.BlockSpec((1, gs, gs), lambda g, t: (g, 0, 0)),   # resident per group
                  pl.BlockSpec((1, gs, 1), lambda g, t: (g, 0, 0)),    # resident per group
                  pl.BlockSpec((1, gs, TP), lambda g, t: (g, 0, t))],
        out_specs=pl.BlockSpec((1, gs, TP), lambda g, t: (g, 0, t)),
        compiler_params=cparams_apply,
    )(L_inv_c, bias, xg)

    # glue: (G, gs, P) -> NCHW
    return jnp.transpose(out.reshape(C, N, H, W), (1, 0, 2, 3))


def _reference(x, group_size, eps=1e-3):
    """Pure-JAX reference mirroring the PyTorch forward (training path)."""
    N, C, H, W = x.shape
    gs = min(C, group_size)
    G = C // gs
    m = x.mean(axis=0).reshape(C, -1).mean(axis=-1).reshape(1, C, 1, 1)
    xn = x - m
    T = jnp.transpose(xn, (1, 0, 2, 3)).reshape(G, gs, -1)
    f_cov = jnp.einsum('gip,gjp->gij', T, T) / T.shape[-1]
    eye = jnp.eye(gs, dtype=jnp.float32)
    f_cov_s = (1 - eps) * f_cov + eps * eye[None]
    L = jnp.linalg.cholesky(f_cov_s)
    L_inv = jax.vmap(
        lambda a: jax.scipy.linalg.solve_triangular(a, eye, lower=True))(L)
    dec = jnp.einsum('gij,gjp->gip', L_inv, T)
    return jnp.transpose(dec.reshape(C, N, H, W), (1, 0, 2, 3))


if __name__ == "__main__":
    key = jax.random.PRNGKey(0)
    N, C, H, W = 2, 8, 16, 16
    group_size = 4
    x = jax.random.normal(key, (N, C, H, W), dtype=jnp.float32)

    ref = _reference(x, group_size, eps=1e-3)

    # f32 carry: algorithmic check at tight tolerance.
    out_f32 = jax.block_until_ready(
        whitening_forward(x, group_size, eps=1e-3, compute_dtype=jnp.float32))
    assert out_f32.shape == (N, C, H, W)
    assert jnp.allclose(out_f32, ref, atol=1e-3, rtol=1e-3), "f32 mismatch vs reference"

    # bf16 carry (default fast path): big tensor in bf16, statistics in f32.
    out_bf16 = jax.block_until_ready(
        whitening_forward(x, group_size, eps=1e-3, compute_dtype=jnp.bfloat16))
    assert out_bf16.shape == (N, C, H, W)
    assert jnp.allclose(out_bf16, ref, atol=5e-2, rtol=5e-2), "bf16 mismatch vs reference"

    print("KERNEL_OK")
</pallas_src>

<mosaic_0001>
module attributes {stable_mosaic.version = 11 : i64} {
  func.func @_stats_kernel(%arg0: i32, %arg1: i32, %arg2: memref<1x4x512xf32, #tpu.memory_space<vmem>>, %arg3: memref<1x4x1xf32, #tpu.memory_space<vmem>>, %arg4: memref<1x4x4xf32, #tpu.memory_space<vmem>>) attributes {dimension_semantics = [#tpu.dimension_semantics<parallel>, #tpu.dimension_semantics<arbitrary>], iteration_bounds = array<i64: 2, 1>, scalar_prefetch = 0 : i64, scratch_operands = 0 : i64, tpu.core_type = #tpu.core_type<tc>, window_params = [{transform_indices = @transform_0, window_bounds = array<i64: 1, 4, 512>}, {transform_indices = @transform_1, window_bounds = array<i64: 1, 4, 1>}, {transform_indices = @transform_2, window_bounds = array<i64: 1, 4, 4>}]} {
    %c0_i32 = arith.constant 0 : i32
    %0 = arith.cmpi eq, %arg1, %c0_i32 : i32
    %1 = arith.extui %0 : i1 to i32
    %c0_i32_0 = arith.constant 0 : i32
    %2 = arith.cmpi ne, %1, %c0_i32_0 : i32
    scf.if %2 {
      %cst_16 = arith.constant 0.000000e+00 : f32
      %20 = vector.broadcast %cst_16 : f32 to vector<1x4x1xf32>
      %c0_17 = arith.constant 0 : index
      %c0_18 = arith.constant 0 : index
      %c0_19 = arith.constant 0 : index
      %21 = vector.load %arg3[%c0_17, %c0_18, %c0_19] : memref<1x4x1xf32, #tpu.memory_space<vmem>>, vector<1x4x1xf32>
      tpu.vector_store %arg3[%c0_17, %c0_18, %c0_19], %20 {strides = array<i32>} : memref<1x4x1xf32, #tpu.memory_space<vmem>>, vector<1x4x1xf32>,
      %cst_20 = arith.constant 0.000000e+00 : f32
      %22 = vector.broadcast %cst_20 : f32 to vector<1x4x4xf32>
      %c0_21 = arith.constant 0 : index
      %c0_22 = arith.constant 0 : index
      %c0_23 = arith.constant 0 : index
      %23 = vector.load %arg4[%c0_21, %c0_22, %c0_23] : memref<1x4x4xf32, #tpu.memory_space<vmem>>, vector<1x4x4xf32>
      tpu.vector_store %arg4[%c0_21, %c0_22, %c0_23], %22 {strides = array<i32>} : memref<1x4x4xf32, #tpu.memory_space<vmem>>, vector<1x4x4xf32>,
    } else {
    }
    %c0 = arith.constant 0 : index
    %c0_1 = arith.constant 0 : index
    %c0_2 = arith.constant 0 : index
    %3 = vector.load %arg2[%c0, %c0_1, %c0_2] : memref<1x4x512xf32, #tpu.memory_space<vmem>>, vector<1x4x512xf32>
    %4 = vector.shape_cast %3 : vector<1x4x512xf32> to vector<4x512xf32>
    %c0_3 = arith.constant 0 : index
    %c0_4 = arith.constant 0 : index
    %c0_5 = arith.constant 0 : index
    %5 = vector.load %arg3[%c0_3, %c0_4, %c0_5] : memref<1x4x1xf32, #tpu.memory_space<vmem>>, vector<1x4x1xf32>
    %6 = vector.shape_cast %5 : vector<1x4x1xf32> to vector<4x1xf32>
    %cst = arith.constant dense<0.000000e+00> : vector<4xf32>
    %7 = vector.multi_reduction <add>, %4, %cst [1] : vector<4x512xf32> to vector<4xf32>
    %8 = vector.shape_cast %7 : vector<4xf32> to vector<4x1xf32>
    %9 = arith.addf %6, %8 : vector<4x1xf32>
    %c0_6 = arith.constant 0 : index
    %c0_7 = arith.constant 0 : index
    %c0_8 = arith.constant 0 : index
    %10 = vector.load %arg3[%c0_6, %c0_7, %c0_8] : memref<1x4x1xf32, #tpu.memory_space<vmem>>, vector<1x4x1xf32>
    %11 = vector.shape_cast %10 : vector<1x4x1xf32> to vector<4x1xf32>
    %12 = vector.shape_cast %9 : vector<4x1xf32> to vector<1x4x1xf32>
    tpu.vector_store %arg3[%c0_6, %c0_7, %c0_8], %12 {strides = array<i32>} : memref<1x4x1xf32, #tpu.memory_space<vmem>>, vector<1x4x1xf32>,
    %c0_9 = arith.constant 0 : index
    %c0_10 = arith.constant 0 : index
    %c0_11 = arith.constant 0 : index
    %13 = vector.load %arg4[%c0_9, %c0_10, %c0_11] : memref<1x4x4xf32, #tpu.memory_space<vmem>>, vector<1x4x4xf32>
    %14 = vector.shape_cast %13 : vector<1x4x4xf32> to vector<4x4xf32>
    %cst_12 = arith.constant dense<0.000000e+00> : vector<4x4xf32>
    %15 = tpu.matmul %4, %4, %cst_12 {dimension_numbers = #tpu.dot_dimension_numbers<[1], [1], [0], [0], [0, 0, 1, 0], [], []>} : vector<4x512xf32>, vector<4x512xf32>, vector<4x4xf32> -> vector<4x4xf32>
    %16 = arith.addf %14, %15 : vector<4x4xf32>
    %c0_13 = arith.constant 0 : index
    %c0_14 = arith.constant 0 : index
    %c0_15 = arith.constant 0 : index
    %17 = vector.load %arg4[%c0_13, %c0_14, %c0_15] : memref<1x4x4xf32, #tpu.memory_space<vmem>>, vector<1x4x4xf32>
    %18 = vector.shape_cast %17 : vector<1x4x4xf32> to vector<4x4xf32>
    %19 = vector.shape_cast %16 : vector<4x4xf32> to vector<1x4x4xf32>
    tpu.vector_store %arg4[%c0_13, %c0_14, %c0_15], %19 {strides = array<i32>} : memref<1x4x4xf32, #tpu.memory_space<vmem>>, vector<1x4x4xf32>,
    return
  }
  func.func @transform_0(%arg0: i32, %arg1: i32) -> (i32, i32, i32) {
    %c0_i32 = arith.constant 0 : i32
    %c0_i32_0 = arith.constant 0 : i32
    return %arg0, %c0_i32, %arg1 : i32, i32, i32
  }
  func.func @transform_1(%arg0: i32, %arg1: i32) -> (i32, i32, i32) {
    %c0_i32 = arith.constant 0 : i32
    %c0_i32_0 = arith.constant 0 : i32
    %c0_i32_1 = arith.constant 0 : i32
    return %arg0, %c0_i32, %c0_i32_0 : i32, i32, i32
  }
  func.func @transform_2(%arg0: i32, %arg1: i32) -> (i32, i32, i32) {
    %c0_i32 = arith.constant 0 : i32
    %c0_i32_0 = arith.constant 0 : i32
    %c0_i32_1 = arith.constant 0 : i32
    return %arg0, %c0_i32, %c0_i32_0 : i32, i32, i32
  }
}

</mosaic_0001>

<bundles_post_ra>
// kernel: tpu_custom_call.1
= control target key start
LH: loop header
LB: loop body
LE: loop exit
PB: predicated region body
PF: predicated region fallthrough
CT: control target
= control target key end

     0   :  { %8 = vsyncpa [#allocation3], 0  ;;  %s798_s0 = inlined_call_operand.hbm [shape: f32[2,4,512], index: 0, kind: input, shape index: {}]   ;;  %s799_s1 = inlined_call_operand.vmem [shape: f32[2,4,1], index: 1, kind: output, shape index: {0}]   ;;  %s800_s2 = inlined_call_operand.hbm [shape: f32[2,4,4], index: 2, kind: output, shape index: {1}]  }
   0x1   :  { %10 = vsyncpa [#allocation3 + $0x1], 0 }
   0x2   :  { %11 = vsyncpa [#allocation4], 0 }
   0x3   :  { %13 = vsyncpa [#allocation4 + $0x1], 0  ;;  %s670_s9 = smov 0   ;;  %s672_s10 = smov 0  }
   0x4   :  { %s674_s11 = smov 0   ;;  %s676_s12 = smov 0  }
   0x5   :  { %s678_s13 = smov 0   ;;  %s680_s14 = smov 0  }
   0x6 LB: > { %s461_s15 = sadd.s32 4294967295, %s652_s14   ;;  %s462_s16 = sadd.s32 4294967294, %s652_s14   ;;  %s652_s14 = sphi %s680_s14, %s19_s14   ;;  %s648_s13 = sphi %s678_s13, %s809_s13   ;;  %s644_s12 = sphi %s676_s12, %s808_s12   ;;  %s640_s11 = sphi %s674_s11, %s807_s11   ;;  %s636_s10 = sphi %s672_s10, %s806_s10   ;;  %s632_s9 = sphi %s670_s9, %s805_s9  }
   0x7   : > { %s31_s17 = sadd.s32 1, %s648_s13  ;;  %s40_s18 = sadd.s32 1, %s640_s11 }
   0x8   : > { %p33_p0 = scmp.ge.s32.totalorder %s31_s17, 2  ;;  %p47_p1 = scmp.ne.s32.totalorder %s640_s11, %s636_s10 }
   0x9   : > { %p48_p2 = scmp.eq.s32.totalorder %s652_s14, 0  ;;  %p53_p3 = scmp.ne.s32.totalorder %s636_s10, %s632_s9 }
   0xa   : > { %s811_s17 = smov (%p33_p0, %s31_s17), 0  ;;  %p54_p5 = scmp.eq.s32.totalorder %s461_s15, 0 }
   0xb   : > { %p711_p4 = por %p48_p2, %p47_p1  ;;  %s35_s20 = ssub.s32 %s648_s13, %s811_s17 }
   0xc   : > { %p103_p6 = scmp.eq.s32.totalorder %s461_s15, 1  ;;  %p38_p7 = scmp.eq.s32.totalorder %s35_s20, 0 }
   0xd   : > { %p717_p8 = por %p54_p5, %p53_p3  ;;  %p109_p10 = scmp.eq.s32.totalorder %s462_s16, 1 }
   0xe   : > { %p721_p9 = por %p103_p6, %p47_p1  ;;  %p464_p12 = scmp.ge.s32.totalorder %s652_s14, 2 }
   0xf   : > { %s726_s23 = scalar_select %p38_p7, %s640_s11, %s40_s18  }
  0x10   : > { %p728_p11 = por %p109_p10, %p53_p3  ;;  %p489_p13 = scmp.lt.s32.totalorder %s652_s14, 2 }
  0x11   : > { %s129_s25 = sand.u32 1, %s640_s11   ;;  %s476_s27 = sshll.u32 %s648_s13, 4 }
  0x12   : > { %s465_s26 = sshll.u32 %s129_s25, 4  ;;  %s140_s30 = scalar_lea.hbm %s798_s0, %s476_s27 }
  0x13   : > { %s133_s3 = scalar_lea.vmem [#allocation2], %s465_s26  ;;  %s142_s5 = sshll.u32 %s140_s30, 4  ;;  %s143_s5 = int_to_ptr.hbm [resolvable:$true] %s142_s5 }
  0x14   : > { %s144_s4 = sshll.u32 %s133_s3, 4  ;;  %p482_p0 = pnand %p489_p13, %p711_p4  ;;  %s145_s4 = int_to_ptr.vmem [resolvable:$true] %s144_s4 }
  0x15   : > { %p468_p1 = scmp.ge.s32.totalorder %s652_s14, 1  ;;  %p149_p2 = scmp.lt.s32.totalorder %s652_s14, 3 }
  0x16   : > { %s130_s6 = scalar_lea.sflag [#allocation3], %s129_s25 }
  0x17   : > { %484 = dma.hbm_to_vmem [thread:$0]  (!%p482_p0), %s143_s5, 256, %s145_s4, %s130_s6  }
  0x18   : > { %p150_p3 = pnand %p468_p1, %p149_p2 }
  0x19   : > { %s744_s7 = sand.u32 (!%p150_p3), 1, %s636_s10  }
  0x1a   : > { %153 = sbr.rel (%p150_p3) target bundleno = 201 (0xc9), region = 24  ;;  %s469_s8 = sshll.u32 (!%p150_p3), %s744_s7, 4 }
  0x1b   : > { %s156_s15 = scalar_lea.sflag (!%p150_p3), [#allocation3], %s744_s7  ;;  %s159_s16 = scalar_lea.vmem (!%p150_p3), [#allocation2], %s469_s8 }
  0x1f   : > { %623 = dma.done.wait (%p717_p8), %s156_s15, 256  }
  0x20   : > { %625 = vsyncadd (%p717_p8), %s156_s15, 4294967040  ;;  %v199_v0 = vld [vmem:[%s159_s16 + $0x8] sm:$0xff]  ;;  %v198_v1 = vld [vmem:[%s159_s16] sm:$0xff]  ;;  %vm214_vm0 = vcmask 1043456   ;;  %p186_p4 = scmp.lt.s32.totalorder %s644_s12, 1  ;;  %s470_s19 = sshll.u32 %s744_s7, 2 }
  0x21   : > { %205 = vst [vmem:[#allocation1 + $0x10] ss:$2 sm:$0xff] %v199_v0  ;;  %vm196_vm1 = vcmask 27648   ;;  %s184_s27 = scalar_lea.vmem [#allocation5], %s470_s19  ;;  %v654_v21 = vmov 0.0   ;;  %vm194_vm2 = vcmask 3072  }
  0x22   : > { %203 = vst [vmem:[#allocation1] ss:$2 sm:$0xff] %v198_v1  ;;  %s187_s18 = scalar_select %p186_p4, %s644_s12, 1 }
  0x23   : > { %197 = vst.msk [vmem:[%s184_s27] sm:$0xf] %vm196_vm1, %v654_v21  ;;  %s473_s28 = sshll.u32 %s644_s12, 2  ;;  %s353_s4 = sshll.u32 %s184_s27, 4  ;;  %s354_s4 = int_to_ptr.vmem [resolvable:$true] %s353_s4 }
  0x24   : > { %s471_s20 = sshll.u32 %s187_s18, 2  ;;  %s351_s3 = scalar_lea.hbm %s800_s2, %s473_s28 }
  0x25   : > { %s189_s26 = scalar_lea.vmem %s799_s1, %s471_s20  ;;  %s355_s5 = sshll.u32 %s351_s3, 4  ;;  %s356_s5 = int_to_ptr.hbm [resolvable:$true] %s355_s5 }
  0x26   : > { %195 = vst.msk [vmem:[%s189_s26] sm:$0xf] %vm194_vm2, %v654_v21  ;;  %s338_s6 = scalar_lea.sflag [#allocation4], %s744_s7  ;;  %s584_s12 = sshra.s32 %s356_s5, 4  ;;  %s585_s12 = int_to_ptr.hbm [resolvable:$true] %s584_s12 }
  0x27   : > { %s586_s8 = scalar_lea.hbm %s585_s12, 4  ;;  %s590_s18 = scalar_lea.hbm %s800_s2, 8 }
  0x28   : > { %v208_v2 = vld.sshfl [vmem:[#allocation1 + $0x10] sm:$0xff pattern:$0x75316420]  ;;  %v209_v3 = vld.sshfl [vmem:[#allocation1 + $0x18] sm:$0xff pattern:$0x75316420]  ;;  %p587_p5 = scmp.ne.s32.totalorder %s585_s12, %s586_s8  ;;  %p591_p8 = scmp.lt.s32.totalorder %s585_s12, %s800_s2 }
  0x29   : > { %230 = vst [vmem:[#allocation1 + $0x10] ss:$2 sm:$0xff] %v199_v0  ;;  %v206_v4 = vld.sshfl [vmem:[#allocation1] sm:$0xff pattern:$0x75316420]  ;;  %v218_v8 = vsel %vm214_vm0, %v208_v2, 0.0  ;;  %p592_p10 = scmp.lt.s32.totalorder %s590_s18, %s586_s8 }
  0x2a   : > { %v207_v5 = vld.sshfl [vmem:[#allocation1 + $0x8] sm:$0xff pattern:$0x75316420]  ;;  %v215_v6 = vsel %vm214_vm0, %v206_v4, 0.0  ;;  %v220_v10 = vsel %vm214_vm0, %v209_v3, 0.0  ;;  %p588_p6 = pnand %p587_p5, %p721_p9 }
  0x2b   : > { %228 = vst [vmem:[#allocation1] ss:$2 sm:$0xff] %v198_v1  ;;  %v216_v7 = vsel %vm214_vm0, %v207_v5, 0.0  ;;  %v227_v31 = vld [vmem:[%s184_s27] sm:$0xf]  ;;  %p593_p13 = por %p592_p10, %p591_p8 }
  0x2c   : > { %v217_v9 = vadd.f32 %v216_v7, %v215_v6  ;;  %p589_p7 = pneg %p588_p6 }
  0x2d   : > { %v200_v22 = vld [vmem:[%s189_s26] sm:$0xf] }
  0x2e   : > { %v219_v11 = vadd.f32 %v218_v8, %v217_v9  ;;  %p594_p0 = pnand %p593_p13, %p589_p7 }
  0x30   : > { %v233_v12 = vld.sshfl [vmem:[#allocation1 + $0x10] sm:$0xff pattern:$0x75316420]  ;;  %v234_v13 = vld.sshfl [vmem:[#allocation1 + $0x18] sm:$0xff pattern:$0x75316420]  ;;  %v221_v14 = vadd.f32 %v220_v10, %v219_v11 }
  0x31   : > { %241 = vst [vmem:[#allocation1 + $0x10] ss:$2 sm:$0xff] %v199_v0 }
  0x32   : > { %v231_v15 = vld.sshfl [vmem:[#allocation1] sm:$0xff pattern:$0x75316420]  ;;  %v232_v16 = vld.sshfl [vmem:[#allocation1 + $0x8] sm:$0xff pattern:$0x75316420]  ;;  %222 = vadd.xlane.f32.xlu0 %v221_v14 }
  0x33   : > { %239 = vst [vmem:[#allocation1] ss:$2 sm:$0xff] %v198_v1 }
  0x38   : > { %v244_v17 = vld.sshfl [vmem:[#allocation1 + $0x10] sm:$0xff pattern:$0x75316420]  ;;  %v245_v18 = vld.sshfl [vmem:[#allocation1 + $0x18] sm:$0xff pattern:$0x75316420] }
  0x39   : > { %305 = vmatpush.xpose.msra.mxu2 %v244_v17  ;;  %325 = vmatpush.xpose.msra.mxu3 %v245_v18 }
  0x3a   : > { %v242_v19 = vld.sshfl [vmem:[#allocation1] sm:$0xff pattern:$0x75316420]  ;;  %v243_v20 = vld.sshfl [vmem:[#allocation1 + $0x8] sm:$0xff pattern:$0x75316420] }
  0x3b   : > { %265 = vmatpush.xpose.msra.mxu0 %v242_v19  ;;  %285 = vmatpush.xpose.msra.mxu1 %v243_v20 }
  0x3c   : > { %306 = vmatmul.f32.vlgmr.msra.gmra.mxu2 %v233_v12  ;;  %326 = vmatmul.f32.vlgmr.msra.gmra.mxu3 %v234_v13 }
  0x3e   : > { %266 = vmatmul.f32.vlgmr.msra.gmra.mxu0 %v231_v15  ;;  %286 = vmatmul.f32.vlgmr.msra.gmra.mxu1 %v232_v16 }
  0xa5   : > { %v223_v23 = vpop.xlane.xlu0 %222 }
  0xa6   : > { %v224_v24 = vadd.f32 %v223_v23, %v200_v22 }
  0xa8   : > { %226 = vst.msk [vmem:[%s189_s26] sm:$0xf] %vm194_vm2, %v224_v24 }
  0xbb   : > { %v267_v25 = vpop.f32.mrf.mxu0  ;;  %v287_v26 = vpop.f32.mrf.mxu1 }
  0xbc   : > { %v288_v27 = vadd.f32 %v287_v26, %v267_v25 }
  0xbf   : > { %v307_v28 = vpop.f32.mrf.mxu2  ;;  %v327_v29 = vpop.f32.mrf.mxu3 }
  0xc0   : > { %v308_v30 = vadd.f32 %v307_v28, %v288_v27 }
  0xc2   : > { %v328_v32 = vadd.f32 %v327_v29, %v308_v30 }
  0xc4   : > { %v330_v33 = vadd.f32 %v328_v32, %v227_v31 }
  0xc6   : > { %332 = vst.msk [vmem:[%s184_s27] sm:$0xf] %vm196_vm1, %v330_v33 }
  0xc7   : > { %597 = shalt.err (!%p594_p0)
}
  0xc8   : > { %479 = dma.vmem_to_hbm [thread:$0]  (%p721_p9), %s354_s4, 64, %s356_s5, %s338_s6  }
  0xc9 PF: > { %s374_s7 = sand.u32 1, %s632_s9   ;;  %p486_p1 = pnand %p464_p12, %p728_p11 }
  0xca   : > { %s375_s21 = scalar_lea.sflag [#allocation4], %s374_s7 }
  0xcb   : > { %p487_p2 = pneg %p486_p1 }
  0xcd   : > { %627 = dma.done.wait (%p487_p2), %s375_s21, 64  }
  0xce   : > { %629 = vsyncadd (%p487_p2), %s375_s21, 4294967232  ;;  %s19_s14 = sadd.s32 1, %s652_s14   ;;  %s805_s9 = smov %s636_s10 }
  0xcf   : > { %p16_p3 = scmp.ge.s32.totalorder %s19_s14, 4   ;;  %s806_s10 = smov %s640_s11 }
  0xd0   : > { %s807_s11 = smov %s726_s23  ;;  %s808_s12 = smov %s648_s13 }
  0xd1   : > { %s809_s13 = smov %s811_s17  ;;  %18 = sbr.rel (!%p16_p3) target bundleno = 6 (0x6), region = 88 }
  0xd6   :  { %381 = vsyncpa [#allocation3], 1 }
  0xd7   :  { %383 = vsyncpa [#allocation3 + $0x1], 1 }
  0xd8   :  { %384 = vsyncpa [#allocation4], 1 }
  0xd9   :  { %386 = vsyncpa [#allocation4 + $0x1], 1 }

</bundles_post_ra>
